<compile_context>
chip_gen: v5e
topology: v5e:2x2
jax: 0.10.0
libtpu: 0.0.40
codegen_flags: <defaults>
</compile_context>

<pallas_src>
import jax
import jax.numpy as jnp
import numpy as np
from jax import lax
from jax.experimental import pallas as pl
from jax.experimental.pallas import tpu as pltpu


_LANE = 128
# Streaming budget for the ~4 double-buffered (C, tile_S) tiles of the scale
# pass (2x input + 2x output).  Stays well under the scoped-VMEM limit on
# every generation (v5e 16 MiB default, v6e/v7x 32 MiB default).
_STREAM_BUDGET_BYTES = 16 * 1024 * 1024
_VMEM_LIMIT_BYTES = 32 * 1024 * 1024


def _choose_s_tile(S, C, itemsize):
    """Largest lane-dense spatial tile (multiple of 128) such that ~4 buffers
    of shape (C, tile_S) fit inside the streaming budget."""
    max_tile = _STREAM_BUDGET_BYTES // (4 * C * itemsize)
    max_tile = max(_LANE, (max_tile // _LANE) * _LANE)
    if S <= max_tile:
        return S          # single full-extent tile (no (8,128) constraint)
    return max_tile


def _make_pool_sum_kernel(S, tile_s):
    """Per-channel sum over the spatial axis, accumulated in f32 directly in
    the resident output block.  Masks out-of-range lanes when S % tile != 0."""
    ragged = (S % tile_s) != 0

    def kernel(x_ref, sum_ref):
        # x_ref: (1, C, tile_s)   sum_ref: (1, C, 1) float32 (resident over s)
        s_idx = pl.program_id(1)

        @pl.when(s_idx == 0)
        def _():
            sum_ref[...] = jnp.zeros_like(sum_ref)

        x = x_ref[...]
        if ragged:
            # Mask lanes past the true spatial extent (boundary block reads
            # undefined values past S); select is free under the HBM bound.
            lane = lax.broadcasted_iota(jnp.int32, x.shape, 2)
            valid = (s_idx * tile_s + lane) < S
            x = jnp.where(valid, x, jnp.zeros_like(x))

        sum_ref[...] += jnp.sum(x, axis=2, keepdims=True, dtype=jnp.float32)

    return kernel


def _scale_kernel(x_ref, gate_ref, o_ref):
    # x_ref/o_ref: (1, C, tile_s)   gate_ref: (1, C, 1) f32
    # Cast the tiny gate column to the input dtype so the big elementwise
    # multiply runs (and stores) in the input dtype; C-on-sublane gate means
    # the scale is a plain lane broadcast.
    gate = gate_ref[...].astype(x_ref.dtype)
    o_ref[...] = (x_ref[...] * gate).astype(o_ref.dtype)


def ffcse_block(x, w1, b1, w2, b2, *, s_tile=None):
    """FFCSE_block forward.  x: (N, C, D, H, W).  Returns same shape/dtype.

    Weight conventions (vs PyTorch):
      w1: (C, Ch)  == fc1.weight.reshape(Ch, C).T      b1: (Ch,)
      w2: (Ch, C)  == fc2.weight.reshape(C, Ch).T      b2: (C,)
    """
    N, C, D, H, W = x.shape
    S = D * H * W
    itemsize = jnp.dtype(x.dtype).itemsize
    tile_s = s_tile if s_tile is not None else _choose_s_tile(S, C, itemsize)
    tile_s = min(tile_s, S)
    n_s_tiles = pl.cdiv(S, tile_s)

    x_flat = x.reshape(N, C, S)          # contiguous reshape, no HBM copy

    # ---- Pass 1: streamed global-sum pool -> (N, C, 1) float32 sums. ----
    sums = pl.pallas_call(
        _make_pool_sum_kernel(S, tile_s),
        out_shape=jax.ShapeDtypeStruct((N, C, 1), jnp.float32),
        grid_spec=pltpu.PrefetchScalarGridSpec(
            num_scalar_prefetch=0,
            grid=(N, n_s_tiles),
            in_specs=[pl.BlockSpec((1, C, tile_s), lambda n, s: (n, 0, s))],
            out_specs=pl.BlockSpec((1, C, 1), lambda n, s: (n, 0, 0))),
        compiler_params=pltpu.CompilerParams(
            dimension_semantics=("parallel", "arbitrary"),
            vmem_limit_bytes=_VMEM_LIMIT_BYTES),
    )(x_flat)

    # ---- Tiny excite FC, once for the whole batch, in f32. ----
    pooled = sums[:, :, 0] / jnp.float32(S)                          # (N, C)
    h = jnp.maximum(pooled @ w1.astype(jnp.float32)
                    + b1.astype(jnp.float32), 0.0)                   # (N, Ch)
    gate = jax.nn.sigmoid(h @ w2.astype(jnp.float32)
                          + b2.astype(jnp.float32))                  # (N, C)
    gate = gate[:, :, None]                                          # (N, C, 1)

    # ---- Pass 2: streamed scale out = x * gate. ----
    out_flat = pl.pallas_call(
        _scale_kernel,
        out_shape=jax.ShapeDtypeStruct((N, C, S), x.dtype),
        grid_spec=pltpu.PrefetchScalarGridSpec(
            num_scalar_prefetch=0,
            grid=(N, n_s_tiles),
            in_specs=[
                pl.BlockSpec((1, C, tile_s), lambda n, s: (n, 0, s)),
                pl.BlockSpec((1, C, 1), lambda n, s: (n, 0, 0)),
            ],
            out_specs=pl.BlockSpec((1, C, tile_s), lambda n, s: (n, 0, s))),
        compiler_params=pltpu.CompilerParams(
            dimension_semantics=("parallel", "parallel"),
            vmem_limit_bytes=_VMEM_LIMIT_BYTES),
    )(x_flat, gate)

    return out_flat.reshape(N, C, D, H, W)


def _reference(x, w1, b1, w2, b2):
    # Pure-JAX reference mirroring the PyTorch forward.
    pooled = jnp.mean(x, axis=(2, 3, 4))                    # (N, C)
    h = jnp.maximum(pooled @ w1 + b1, 0.0)                  # (N, Ch)
    s = jax.nn.sigmoid(h @ w2 + b2)                         # (N, C)
    return x * s[:, :, None, None, None]


def _make_inputs(key, N, C, D, H, W, ratio):
    Ch = max(1, C // ratio)
    k_x, k_w1, k_b1, k_w2, k_b2 = jax.random.split(key, 5)
    x = jax.random.normal(k_x, (N, C, D, H, W), dtype=jnp.float32)
    # PyTorch fc1.weight: (Ch, C, 1,1,1) -> stored here as (C, Ch)
    w1 = jax.random.normal(k_w1, (C, Ch), dtype=jnp.float32) * 0.1
    b1 = jax.random.normal(k_b1, (Ch,), dtype=jnp.float32) * 0.1
    # PyTorch fc2.weight: (C, Ch, 1,1,1) -> stored here as (Ch, C)
    w2 = jax.random.normal(k_w2, (Ch, C), dtype=jnp.float32) * 0.1
    b2 = jax.random.normal(k_b2, (C,), dtype=jnp.float32) * 0.1
    return x, w1, b1, w2, b2


if __name__ == "__main__":
    key = jax.random.PRNGKey(0)
    k1, k2 = jax.random.split(key, 2)

    # Test 1: single full-extent spatial tile (the common small case).
    x, w1, b1, w2, b2 = _make_inputs(k1, N=2, C=32, D=8, H=8, W=8, ratio=16)
    out = jax.block_until_ready(ffcse_block(x, w1, b1, w2, b2))
    ref = _reference(x, w1, b1, w2, b2)
    np.testing.assert_allclose(np.asarray(out), np.asarray(ref),
                               rtol=1e-5, atol=1e-5)

    # Test 2: multi-tile + ragged spatial extent (S = 5*7*11 = 385, tile 128)
    # exercises the lane-masked pool path and masked partial output writes.
    x, w1, b1, w2, b2 = _make_inputs(k2, N=1, C=16, D=5, H=7, W=11, ratio=8)
    out = jax.block_until_ready(ffcse_block(x, w1, b1, w2, b2, s_tile=128))
    ref = _reference(x, w1, b1, w2, b2)
    np.testing.assert_allclose(np.asarray(out), np.asarray(ref),
                               rtol=1e-5, atol=1e-5)

    print("KERNEL_OK")
</pallas_src>

<mosaic_0001>
module attributes {stable_mosaic.version = 11 : i64} {
  func.func @kernel(%arg0: i32, %arg1: i32, %arg2: memref<1x32x512xf32, #tpu.memory_space<vmem>>, %arg3: memref<1x32x1xf32, #tpu.memory_space<vmem>>) attributes {dimension_semantics = [#tpu.dimension_semantics<parallel>, #tpu.dimension_semantics<arbitrary>], iteration_bounds = array<i64: 2, 1>, scalar_prefetch = 0 : i64, scratch_operands = 0 : i64, tpu.core_type = #tpu.core_type<tc>, window_params = [{transform_indices = @transform_0, window_bounds = array<i64: 1, 32, 512>}, {transform_indices = @transform_1, window_bounds = array<i64: 1, 32, 1>}]} {
    %c0_i32 = arith.constant 0 : i32
    %0 = arith.cmpi eq, %arg1, %c0_i32 : i32
    %1 = arith.extui %0 : i1 to i32
    %c0_i32_0 = arith.constant 0 : i32
    %2 = arith.cmpi ne, %1, %c0_i32_0 : i32
    scf.if %2 {
      %cst_9 = arith.constant 0.000000e+00 : f32
      %9 = vector.broadcast %cst_9 : f32 to vector<1x32x1xf32>
      %c0_10 = arith.constant 0 : index
      %c0_11 = arith.constant 0 : index
      %c0_12 = arith.constant 0 : index
      %10 = vector.load %arg3[%c0_10, %c0_11, %c0_12] : memref<1x32x1xf32, #tpu.memory_space<vmem>>, vector<1x32x1xf32>
      tpu.vector_store %arg3[%c0_10, %c0_11, %c0_12], %9 {strides = array<i32>} : memref<1x32x1xf32, #tpu.memory_space<vmem>>, vector<1x32x1xf32>,
    } else {
    }
    %c0 = arith.constant 0 : index
    %c0_1 = arith.constant 0 : index
    %c0_2 = arith.constant 0 : index
    %3 = vector.load %arg2[%c0, %c0_1, %c0_2] : memref<1x32x512xf32, #tpu.memory_space<vmem>>, vector<1x32x512xf32>
    %c0_3 = arith.constant 0 : index
    %c0_4 = arith.constant 0 : index
    %c0_5 = arith.constant 0 : index
    %4 = vector.load %arg3[%c0_3, %c0_4, %c0_5] : memref<1x32x1xf32, #tpu.memory_space<vmem>>, vector<1x32x1xf32>
    %cst = arith.constant dense<0.000000e+00> : vector<1x32xf32>
    %5 = vector.multi_reduction <add>, %3, %cst [2] : vector<1x32x512xf32> to vector<1x32xf32>
    %6 = vector.shape_cast %5 : vector<1x32xf32> to vector<1x32x1xf32>
    %7 = arith.addf %4, %6 : vector<1x32x1xf32>
    %c0_6 = arith.constant 0 : index
    %c0_7 = arith.constant 0 : index
    %c0_8 = arith.constant 0 : index
    %8 = vector.load %arg3[%c0_6, %c0_7, %c0_8] : memref<1x32x1xf32, #tpu.memory_space<vmem>>, vector<1x32x1xf32>
    tpu.vector_store %arg3[%c0_6, %c0_7, %c0_8], %7 {strides = array<i32>} : memref<1x32x1xf32, #tpu.memory_space<vmem>>, vector<1x32x1xf32>,
    return
  }
  func.func @transform_0(%arg0: i32, %arg1: i32) -> (i32, i32, i32) {
    %c0_i32 = arith.constant 0 : i32
    %c0_i32_0 = arith.constant 0 : i32
    return %arg0, %c0_i32, %arg1 : i32, i32, i32
  }
  func.func @transform_1(%arg0: i32, %arg1: i32) -> (i32, i32, i32) {
    %c0_i32 = arith.constant 0 : i32
    %c0_i32_0 = arith.constant 0 : i32
    %c0_i32_1 = arith.constant 0 : i32
    return %arg0, %c0_i32, %c0_i32_0 : i32, i32, i32
  }
}

</mosaic_0001>

<bundles_post_ra>
// kernel: tpu_custom_call.1
= control target key start
LH: loop header
LB: loop body
LE: loop exit
PB: predicated region body
PF: predicated region fallthrough
CT: control target
= control target key end

     0   :  { %6 = vsyncpa [#allocation3], 0  ;;  %s588_s0 = inlined_call_operand.hbm [shape: f32[2,32,512], index: 0, kind: input, shape index: {}]   ;;  %s589_s1 = inlined_call_operand.vmem [shape: f32[2,32,1], index: 1, kind: output, shape index: {}]  }
   0x1   :  { %8 = vsyncpa [#allocation3 + $0x1], 0  ;;  %s460_s6 = smov 0   ;;  %s462_s7 = smov 0  }
   0x2   :  { %s464_s8 = smov 0   ;;  %s466_s9 = smov 0  }
   0x3   :  { %s468_s10 = smov 0   ;;  %s470_s11 = smov 0  }
   0x4 LB: > { %s292_s12 = sadd.s32 4294967295, %s445_s11   ;;  %s26_s13 = sadd.s32 1, %s441_s10  ;;  %s445_s11 = sphi %s470_s11, %s14_s11   ;;  %s441_s10 = sphi %s468_s10, %s596_s10   ;;  %s437_s9 = sphi %s466_s9, %s595_s9   ;;  %s433_s8 = sphi %s464_s8, %s594_s8   ;;  %s429_s7 = sphi %s462_s7, %s593_s7   ;;  %s425_s6 = sphi %s460_s6, %s592_s6  }
   0x5   : > { %p28_p0 = scmp.ge.s32.totalorder %s26_s13, 2  ;;  %s35_s14 = sadd.s32 1, %s433_s8 }
   0x6   : > { %p42_p1 = scmp.ne.s32.totalorder %s433_s8, %s429_s7  ;;  %p43_p2 = scmp.eq.s32.totalorder %s445_s11, 0 }
   0x7   : > { %s598_s13 = smov (%p28_p0, %s26_s13), 0  ;;  %p48_p4 = scmp.ne.s32.totalorder %s429_s7, %s425_s6 }
   0x8   : > { %p496_p3 = por %p43_p2, %p42_p1  ;;  %s30_s16 = ssub.s32 %s441_s10, %s598_s13 }
   0x9   : > { %p49_p5 = scmp.eq.s32.totalorder %s292_s12, 0  ;;  %p33_p6 = scmp.eq.s32.totalorder %s30_s16, 0 }
   0xa   : > { %p313_p8 = scmp.lt.s32.totalorder %s445_s11, 2  ;;  %s98_s19 = sand.u32 1, %s433_s8  }
   0xb   : > { %p503_p7 = por %p49_p5, %p48_p4  ;;  %s305_s20 = sshll.u32 %s441_s10, 7 }
   0xc   : > { %s509_s18 = scalar_select %p33_p6, %s433_s8, %s35_s14  }
   0xd   : > { %s296_s21 = sshll.u32 %s98_s19, 7  ;;  %s109_s24 = scalar_lea.hbm %s588_s0, %s305_s20 }
   0xe   : > { %s110_s25 = sshll.u32 %s109_s24, 4  ;;  %s102_s26 = scalar_lea.vmem [#allocation2], %s296_s21  ;;  %s111_s25 = int_to_ptr.hbm [resolvable:$true] %s110_s25 }
   0xf   : > { %s112_s27 = sshll.u32 %s102_s26, 4  ;;  %p310_p9 = pnand %p313_p8, %p496_p3  ;;  %s113_s27 = int_to_ptr.vmem [resolvable:$true] %s112_s27 }
  0x10   : > { %p299_p10 = scmp.ge.s32.totalorder %s445_s11, 1  ;;  %p120_p11 = scmp.lt.s32.totalorder %s445_s11, 3 }
  0x11   : > { %s99_s28 = scalar_lea.sflag [#allocation3], %s98_s19  ;;  %s447_s29 = smov 512  }
  0x12   : > { %s448_s30 = smov 32   ;;  %p121_p12 = pnand %p299_p10, %p120_p11 }
  0x13   : > { %312 = dma.hbm_to_vmem [thread:$0]  (!%p310_p9), %s111_s25, 2048, %s113_s27, %s99_s28, %s447_s29, %s447_s29, %s448_s30  }
  0x14   : > { %124 = sbr.rel (%p121_p12) target bundleno = 161 (0xa1), region = 24  ;;  %s126_s2 = sand.u32 (!%p121_p12), 1, %s429_s7  }
  0x15   : > { %s300_s3 = sshll.u32 (!%p121_p12), %s126_s2, 7  ;;  %s127_s4 = scalar_lea.sflag (!%p121_p12), [#allocation3], %s126_s2 }
  0x16   : > { %s521_s5 = scalar_lea.vmem (!%p121_p12), [#allocation2], %s300_s3 }
  0x19   : > { %420 = dma.done.wait (%p503_p7), %s127_s4, 2048  }
  0x1a   : > { %422 = vsyncadd (%p503_p7), %s127_s4, 4294965248  ;;  %p151_p13 = scmp.lt.s32.totalorder %s437_s9, 1  ;;  %vm160_vm0 = vcmask 7168   ;;  %v449_v0 = vmov 0.0   ;;  %v173_v1 = vld [vmem:[%s521_s5 + $0x40] sm:$0xff]  ;;  %v174_v2 = vld [vmem:[%s521_s5 + $0x48] sm:$0xff] }
  0x1b   : > { %v175_v3 = vld [vmem:[%s521_s5 + $0x50] sm:$0xff]  ;;  %v195_v4 = vadd.f32 %v174_v2, %v173_v1  ;;  %v165_v5 = vld [vmem:[%s521_s5] sm:$0xff]  ;;  %v166_v6 = vld [vmem:[%s521_s5 + $0x8] sm:$0xff] }
  0x1c   : > { %s600_s9 = smov (!%p151_p13, %s437_s9), 1  ;;  %v176_v7 = vld [vmem:[%s521_s5 + $0x58] sm:$0xff]  ;;  %v167_v8 = vld [vmem:[%s521_s5 + $0x10] sm:$0xff]  ;;  %v185_v9 = vadd.f32 %v166_v6, %v165_v5  ;;  %v177_v10 = vld [vmem:[%s521_s5 + $0x60] sm:$0xff] }
  0x1d   : > { %s306_s6 = sshll.u32 %s600_s9, 5  ;;  %v196_v11 = vadd.f32 %v195_v4, %v175_v3  ;;  %v168_v12 = vld [vmem:[%s521_s5 + $0x18] sm:$0xff]  ;;  %v178_v13 = vld [vmem:[%s521_s5 + $0x68] sm:$0xff]  ;;  %v179_v15 = vld [vmem:[%s521_s5 + $0x70] sm:$0xff] }
  0x1e   : > { %s532_s15 = scalar_lea.vmem %s589_s1, %s306_s6  ;;  %v186_v14 = vadd.f32 %v185_v9, %v167_v8  ;;  %v200_v16 = vadd.f32 %v178_v13, %v177_v10  ;;  %v169_v17 = vld [vmem:[%s521_s5 + $0x20] sm:$0xff]  ;;  %v170_v18 = vld [vmem:[%s521_s5 + $0x28] sm:$0xff]  ;;  %v171_v20 = vld [vmem:[%s521_s5 + $0x30] sm:$0xff] }
  0x1f   : > { %163 = vst.msk [vmem:[%s532_s15 + $0x10] sm:$0xff] %vm160_vm0, %v449_v0  ;;  %v197_v19 = vadd.f32 %v196_v11, %v176_v7  ;;  %v190_v21 = vadd.f32 %v170_v18, %v169_v17  ;;  %v180_v24 = vld [vmem:[%s521_s5 + $0x78] sm:$0xff] }
  0x20   : > { %161 = vst.msk [vmem:[%s532_s15] sm:$0xff] %vm160_vm0, %v449_v0  ;;  %v187_v22 = vadd.f32 %v186_v14, %v168_v12  ;;  %v201_v23 = vadd.f32 %v200_v16, %v179_v15  ;;  %v172_v26 = vld [vmem:[%s521_s5 + $0x38] sm:$0xff] }
  0x21   : > { %162 = vst.msk [vmem:[%s532_s15 + $0x8] sm:$0xff] %vm160_vm0, %v449_v0  ;;  %198 = vadd.xlane.f32.xlu1 %v197_v19  ;;  %v191_v25 = vadd.f32 %v190_v21, %v171_v20 }
  0x22   : > { %164 = vst.msk [vmem:[%s532_s15 + $0x18] sm:$0xff] %vm160_vm0, %v449_v0  ;;  %188 = vadd.xlane.f32.xlu0 %v187_v22  ;;  %v202_v27 = vadd.f32 %v201_v23, %v180_v24 }
  0x23   : > { %v192_v28 = vadd.f32 %v191_v25, %v172_v26 }
  0x26   : > { %v183_v29 = vld [vmem:[%s532_s15 + $0x10] sm:$0xff] }
  0x27   : > { %v181_v30 = vld [vmem:[%s532_s15] sm:$0xff] }
  0x28   : > { %v182_v36 = vld [vmem:[%s532_s15 + $0x8] sm:$0xff] }
  0x29   : > { %203 = vadd.xlane.f32.xlu1 %v202_v27  ;;  %v184_v35 = vld [vmem:[%s532_s15 + $0x18] sm:$0xff] }
  0x2a   : > { %193 = vadd.xlane.f32.xlu0 %v192_v28 }
  0x94   : > { %v199_v31 = vpop.xlane.xlu1 %198 }
  0x95   : > { %v207_v32 = vadd.f32 %v199_v31, %v183_v29  ;;  %v189_v33 = vpop.xlane.xlu0 %188 }
  0x96   : > { %v205_v34 = vadd.f32 %v189_v33, %v181_v30 }
  0x97   : > { %212 = vst.msk [vmem:[%s532_s15 + $0x10] sm:$0xff] %vm160_vm0, %v207_v32 }
  0x98   : > { %210 = vst.msk [vmem:[%s532_s15] sm:$0xff] %vm160_vm0, %v205_v34 }
  0x9c   : > { %v204_v37 = vpop.xlane.xlu1 %203 }
  0x9d   : > { %v208_v38 = vadd.f32 %v204_v37, %v184_v35  ;;  %v194_v39 = vpop.xlane.xlu0 %193 }
  0x9e   : > { %v206_v40 = vadd.f32 %v194_v39, %v182_v36 }
  0x9f   : > { %213 = vst.msk [vmem:[%s532_s15 + $0x18] sm:$0xff] %vm160_vm0, %v208_v38 }
  0xa0   : > { %211 = vst.msk [vmem:[%s532_s15 + $0x8] sm:$0xff] %vm160_vm0, %v206_v40 }
  0xa1 PF: > { %s14_s11 = sadd.s32 1, %s445_s11   ;;  %s592_s6 = smov %s429_s7 }
  0xa2   : > { %p11_p0 = scmp.ge.s32.totalorder %s14_s11, 4   ;;  %s593_s7 = smov %s433_s8 }
  0xa3   : > { %s594_s8 = smov %s509_s18  ;;  %s595_s9 = smov %s441_s10 }
  0xa4   : > { %s596_s10 = smov %s598_s13  ;;  %13 = sbr.rel (!%p11_p0) target bundleno = 4 (0x4), region = 68 }
  0xa9   :  { %235 = vsyncpa [#allocation3], 1 }
  0xaa   :  { %237 = vsyncpa [#allocation3 + $0x1], 1 }

</bundles_post_ra>
